<compile_context>
chip_gen: v7x
topology: tpu7x:2x2x1
jax: 0.10.0
libtpu: 0.0.40
codegen_flags: <defaults>
</compile_context>

<pallas_src>
import functools

import jax
import jax.numpy as jnp
from jax.experimental import pallas as pl
from jax.experimental.pallas import tpu as pltpu


def _round_up(x, m):
    return ((x + m - 1) // m) * m


def _vmem_plan():
    """Generation-aware (vmem_limit_bytes, pipeline-buffer budget)."""
    phys = 64 * 1024 * 1024  # conservative fallback (v7x per-TensorCore VMEM)
    try:
        info = pltpu.get_tpu_info()
        cap = getattr(info, "vmem_capacity_bytes", None)
        if cap:
            phys = int(cap)
    except Exception:
        pass
    # v5e/v6e (128 MiB physical) -> 64 MiB scoped limit; v7x (64 MiB) -> 32 MiB.
    vmem_limit = int(min(phys // 2, 64 * 1024 * 1024))
    budget = (vmem_limit * 3) // 4          # headroom for output buffers / spills
    return vmem_limit, budget


def _row_tile(m, lp, itemsize, budget):
    # Per tile row: 2 inputs x 2 pipeline buffers at the input itemsize plus
    # ~5 live f32 temporaries (g, p, acc, shifted, sq) materialized in VMEM.
    per_row = lp * (2 * 2 * itemsize + 5 * 4)
    tm = budget // per_row
    tm = min(tm, 4096, _round_up(m, 8))
    tm = max(8, (tm // 8) * 8)
    return int(tm)


def _smooth_mse_kernel(pred_ref, gold_ref, out_ref, *, win, pad_left,
                       l_valid, rows_valid, tm, mask_rows):
    # pred_ref/gold_ref: (TM, Lp) tiles; out_ref: (1, Lp) per-tile partial sums.
    g = gold_ref[...].astype(jnp.float32)
    p = pred_ref[...].astype(jnp.float32)
    lp = g.shape[-1]
    mask_lanes = l_valid < lp               # static Python bool

    lane_ok = None
    if mask_lanes:
        lane = jax.lax.broadcasted_iota(jnp.int32, g.shape, 1)
        lane_ok = lane < l_valid
        # Zero the lane-padding region ONCE; Lp - L >= win - 1 guarantees every
        # tap below only ever wraps these zeros back into [0, L).
        g = jnp.where(lane_ok, g, 0.0)

    # Sliding average: smooth[i] = (1/win) * sum_s gold_z[i + s],
    # s in [-pad_left, win - 1 - pad_left], with zero 'SAME' padding.
    acc = jnp.zeros_like(g)
    for s in range(-pad_left, win - pad_left):
        acc = acc + (g if s == 0 else pltpu.roll(g, (-s) % lp, axis=1))
    diff = p - acc * (1.0 / win)
    sq = diff * diff

    # Single mask application: drop lane padding and (for a ragged last row
    # tile) the out-of-bounds rows, whose block contents are unspecified.
    valid = lane_ok
    if mask_rows:
        row = jax.lax.broadcasted_iota(jnp.int32, g.shape, 0)
        row_ok = (pl.program_id(0) * tm + row) < rows_valid
        valid = row_ok if valid is None else (valid & row_ok)
    if valid is not None:
        sq = jnp.where(valid, sq, 0.0)

    # Sublane-only reduce -> lane-dense (1, Lp) unmasked store; the cross-lane
    # and cross-tile sums happen in the (tiny) JAX epilogue.
    out_ref[...] = jnp.sum(sq, axis=0, keepdims=True)


class SmoothMSELoss:
    """JAX/Pallas port of kdd_wdf_new_dayseq.loss.SmoothMSELoss (forward)."""

    def __init__(self, **kwargs):
        self.smooth_win = int(kwargs["smooth_win"])

    def __call__(self, pred, gold, raw=None, col_names=None):
        # raw / col_names are unused by the reference forward pass.
        n, c, l = gold.shape
        m = n * c
        win = self.smooth_win
        pad_left = (win - 1) // 2            # TF/Paddle 'SAME', stride 1

        # Lane block: multiple of 128 with >= win-1 slack lanes for the rolls.
        lp = _round_up(l + max(win - 1, 0), 128)

        itemsize = max(jnp.dtype(pred.dtype).itemsize,
                       jnp.dtype(gold.dtype).itemsize)
        vmem_limit, budget = _vmem_plan()
        tm = _row_tile(m, lp, itemsize, budget)
        num_tiles = (m + tm - 1) // tm
        mask_rows = (m % tm) != 0

        # No padding copies: just views of the original arrays in HBM.
        pred2d = pred.reshape(m, l)
        gold2d = gold.reshape(m, l)

        kernel = functools.partial(
            _smooth_mse_kernel, win=win, pad_left=pad_left,
            l_valid=l, rows_valid=m, tm=tm, mask_rows=mask_rows)

        partial_sums = pl.pallas_call(
            kernel,
            out_shape=jax.ShapeDtypeStruct((num_tiles, lp), jnp.float32),
            grid=(num_tiles,),
            in_specs=[
                pl.BlockSpec((tm, lp), lambda i: (i, 0)),   # pred tile
                pl.BlockSpec((tm, lp), lambda i: (i, 0)),   # gold tile
            ],
            out_specs=pl.BlockSpec((1, lp), lambda i: (i, 0)),
            compiler_params=pltpu.CompilerParams(
                dimension_semantics=("parallel",),
                vmem_limit_bytes=vmem_limit),
        )(pred2d, gold2d)

        # Tiny final reduction + mean scale (count = original N*C*L elements).
        return jnp.sum(partial_sums) / float(n * c * l)


def _reference(pred, gold, smooth_win):
    # Pure-JAX reference of the same math for a sanity check.
    _, _, l = gold.shape
    win = smooth_win
    pad_left = (win - 1) // 2
    pad_right = win - 1 - pad_left
    gpad = jnp.pad(gold.astype(jnp.float32),
                   ((0, 0), (0, 0), (pad_left, pad_right)))
    smooth = sum(gpad[..., k:k + l] for k in range(win)) / float(win)
    return jnp.mean((pred.astype(jnp.float32) - smooth) ** 2)


if __name__ == "__main__":
    key = jax.random.PRNGKey(0)
    kp, kg, kp2, kg2 = jax.random.split(key, 4)

    smooth_win = 5
    loss_fn = SmoothMSELoss(smooth_win=smooth_win)

    # Case 1: batch=2, channels=4, seq=16 (exact row tile, padded lane block).
    N, C, L = 2, 4, 16
    pred = jax.random.normal(kp, (N, C, L), dtype=jnp.float32)
    gold = jax.random.normal(kg, (N, C, L), dtype=jnp.float32)
    loss = loss_fn(pred, gold, raw=None, col_names=None)
    jax.block_until_ready(loss)
    ref = _reference(pred, gold, smooth_win)
    assert jnp.allclose(loss, ref, rtol=1e-5, atol=1e-5), (loss, ref)

    # Case 2: ragged row tile (M = 15 rows) + non-multiple-of-128 seq length.
    N2, C2, L2 = 3, 5, 100
    pred2 = jax.random.normal(kp2, (N2, C2, L2), dtype=jnp.float32)
    gold2 = jax.random.normal(kg2, (N2, C2, L2), dtype=jnp.float32)
    loss2 = loss_fn(pred2, gold2, raw=None, col_names=None)
    jax.block_until_ready(loss2)
    ref2 = _reference(pred2, gold2, smooth_win)
    assert jnp.allclose(loss2, ref2, rtol=1e-5, atol=1e-5), (loss2, ref2)

    print("KERNEL_OK")
</pallas_src>

<mosaic_0001>
module attributes {stable_mosaic.version = 11 : i64} {
  func.func @_smooth_mse_kernel(%arg0: i32, %arg1: memref<8x128xf32, #tpu.memory_space<vmem>>, %arg2: memref<8x128xf32, #tpu.memory_space<vmem>>, %arg3: memref<1x128xf32, #tpu.memory_space<vmem>>) attributes {dimension_semantics = [#tpu.dimension_semantics<parallel>], iteration_bounds = array<i64: 1>, scalar_prefetch = 0 : i64, scratch_operands = 0 : i64, tpu.core_type = #tpu.core_type<tc>, window_params = [{transform_indices = @transform_0, window_bounds = array<i64: 8, 128>}, {transform_indices = @transform_1, window_bounds = array<i64: 8, 128>}, {transform_indices = @transform_2, window_bounds = array<i64: 1, 128>}]} {
    %c0 = arith.constant 0 : index
    %c0_0 = arith.constant 0 : index
    %0 = vector.load %arg2[%c0, %c0_0] : memref<8x128xf32, #tpu.memory_space<vmem>>, vector<8x128xf32>
    %c0_1 = arith.constant 0 : index
    %c0_2 = arith.constant 0 : index
    %1 = vector.load %arg1[%c0_1, %c0_2] : memref<8x128xf32, #tpu.memory_space<vmem>>, vector<8x128xf32>
    %2 = tpu.iota {dimensions = array<i32: 1>} : vector<8x128xi32>
    %c16_i32 = arith.constant 16 : i32
    %3 = vector.broadcast %c16_i32 : i32 to vector<8x128xi32>
    %4 = arith.cmpi slt, %2, %3 : vector<8x128xi32>
    %cst = arith.constant 0.000000e+00 : f32
    %5 = vector.broadcast %cst : f32 to vector<8x128xf32>
    %6 = arith.select %4, %0, %5 : vector<8x128xi1>, vector<8x128xf32>
    %cst_3 = arith.constant 0.000000e+00 : f32
    %7 = vector.broadcast %cst_3 : f32 to vector<8x128xf32>
    %c2_i32 = arith.constant 2 : i32
    %8 = tpu.dynamic_rotate %6 by %c2_i32 dim 1 : vector<8x128xf32>, i32 -> vector<8x128xf32>
    %9 = arith.addf %7, %8 : vector<8x128xf32>
    %c1_i32 = arith.constant 1 : i32
    %10 = tpu.dynamic_rotate %6 by %c1_i32 dim 1 : vector<8x128xf32>, i32 -> vector<8x128xf32>
    %11 = arith.addf %9, %10 : vector<8x128xf32>
    %12 = arith.addf %11, %6 : vector<8x128xf32>
    %c127_i32 = arith.constant 127 : i32
    %13 = tpu.dynamic_rotate %6 by %c127_i32 dim 1 : vector<8x128xf32>, i32 -> vector<8x128xf32>
    %14 = arith.addf %12, %13 : vector<8x128xf32>
    %c126_i32 = arith.constant 126 : i32
    %15 = tpu.dynamic_rotate %6 by %c126_i32 dim 1 : vector<8x128xf32>, i32 -> vector<8x128xf32>
    %16 = arith.addf %14, %15 : vector<8x128xf32>
    %cst_4 = arith.constant 2.000000e-01 : f32
    %17 = vector.broadcast %cst_4 : f32 to vector<8x128xf32>
    %18 = arith.mulf %16, %17 : vector<8x128xf32>
    %19 = arith.subf %1, %18 : vector<8x128xf32>
    %20 = arith.mulf %19, %19 : vector<8x128xf32>
    %cst_5 = arith.constant 0.000000e+00 : f32
    %21 = vector.broadcast %cst_5 : f32 to vector<8x128xf32>
    %22 = arith.select %4, %20, %21 : vector<8x128xi1>, vector<8x128xf32>
    %cst_6 = arith.constant dense<0.000000e+00> : vector<128xf32>
    %23 = vector.multi_reduction <add>, %22, %cst_6 [0] : vector<8x128xf32> to vector<128xf32>
    %24 = vector.shape_cast %23 : vector<128xf32> to vector<1x128xf32>
    %c0_7 = arith.constant 0 : index
    %c0_8 = arith.constant 0 : index
    %25 = vector.load %arg3[%c0_7, %c0_8] : memref<1x128xf32, #tpu.memory_space<vmem>>, vector<1x128xf32>
    tpu.vector_store %arg3[%c0_7, %c0_8], %24 {strides = array<i32>} : memref<1x128xf32, #tpu.memory_space<vmem>>, vector<1x128xf32>,
    return
  }
  func.func @transform_0(%arg0: i32) -> (i32, i32) {
    %c0_i32 = arith.constant 0 : i32
    %c0_i32_0 = arith.constant 0 : i32
    return %arg0, %c0_i32 : i32, i32
  }
  func.func @transform_1(%arg0: i32) -> (i32, i32) {
    %c0_i32 = arith.constant 0 : i32
    %c0_i32_0 = arith.constant 0 : i32
    return %arg0, %c0_i32 : i32, i32
  }
  func.func @transform_2(%arg0: i32) -> (i32, i32) {
    %c0_i32 = arith.constant 0 : i32
    %c0_i32_0 = arith.constant 0 : i32
    return %arg0, %c0_i32 : i32, i32
  }
}

</mosaic_0001>

<bundles_post_ra>
// kernel: tpu_custom_call.1
= control target key start
LH: loop header
LB: loop body
LE: loop exit
PB: predicated region body
PF: predicated region fallthrough
CT: control target
= control target key end

     0   :  { %7 = vsyncpa [#allocation3], 0  ;;  %s221_s0 = inlined_call_operand.hbm [shape: f32[8,16], index: 0, kind: input, shape index: {}]   ;;  %s222_s1 = inlined_call_operand.hbm [shape: f32[8,16], index: 1, kind: input, shape index: {}]   ;;  %s223_s2 = inlined_call_operand.hbm [shape: f32[1,128], index: 2, kind: output, shape index: {}]  }
   0x1   :  { %8 = vsyncpa [#allocation6], 0 }
   0x2   :  { %9 = vsyncpa [#allocation4], 0  ;;  %s161_s9 = smov [#allocation2]   ;;  %s162_s11 = smov [#allocation5]  }
   0x3   :  { %s16_s10 = sshll.u32 %s161_s9, 4  ;;  %s26_s12 = sshll.u32 %s162_s11, 4  ;;  %s17_s10 = int_to_ptr.vmem [resolvable:$true] %s16_s10  ;;  %s27_s12 = int_to_ptr.vmem [resolvable:$true] %s26_s12 }
   0x4   :  { %s89_s15 = scalar_lea.hbm %s221_s0, 128 }
   0x5   :  { %p90_p0 = scmp.ne.s32.totalorder %s221_s0, %s89_s15  ;;  %p93_p1 = scmp.lt.u32.totalorder %s89_s15, %s221_s0 }
   0x7   :  { %p95_p2 = pnand %p93_p1, %p90_p0 }
   0x9   :  { %98 = shalt.err (!%p95_p2)
}
   0xa   :  { %s99_s20 = scalar_lea.vmem %s17_s10, 128  ;;  %p104_p4 = scmp.lt.s32.totalorder %s17_s10, %s17_s10 }
   0xb   :  { %p100_p3 = scmp.ne.s32.totalorder %s17_s10, %s99_s20  ;;  %p105_p5 = scmp.lt.s32.totalorder %s99_s20, %s99_s20 }
   0xd   :  { %p106_p6 = por %p105_p5, %p104_p4 }
   0xf   :  { %p107_p7 = pnand %p106_p6, %p100_p3 }
  0x11   :  { %110 = shalt.err (!%p107_p7)
}
  0x12   :  { %19 = dma.hbm_to_vmem [thread:$0]  %s221_s0, 128, %s17_s10, [#allocation3]  }
  0x13   :  { %s111_s25 = scalar_lea.hbm %s222_s1, 128 }
  0x14   :  { %p112_p8 = scmp.ne.s32.totalorder %s222_s1, %s111_s25  ;;  %p115_p9 = scmp.lt.u32.totalorder %s111_s25, %s222_s1 }
  0x16   :  { %p117_p10 = pnand %p115_p9, %p112_p8 }
  0x18   :  { %120 = shalt.err (!%p117_p10)
}
  0x19   :  { %s121_s30 = scalar_lea.vmem %s27_s12, 128  ;;  %p126_p12 = scmp.lt.s32.totalorder %s27_s12, %s27_s12 }
  0x1a   :  { %p122_p11 = scmp.ne.s32.totalorder %s27_s12, %s121_s30  ;;  %p127_p13 = scmp.lt.s32.totalorder %s121_s30, %s121_s30 }
  0x1c   :  { %p128_p0 = por %p127_p13, %p126_p12 }
  0x1e   :  { %p129_p1 = pnand %p128_p0, %p122_p11 }
  0x20   :  { %132 = shalt.err (!%p129_p1)
}
  0x21   :  { %29 = dma.hbm_to_vmem [thread:$0]  %s222_s1, 128, %s27_s12, [#allocation6]  }
  0x22   :  { %155 = dma.done.wait [#allocation3], 128  }
  0x23   :  { %156 = vsyncadd [#allocation3], 4294967168 }
  0x24   :  { %157 = dma.done.wait [#allocation6], 128  }
  0x25   :  { %158 = vsyncadd [#allocation6], 4294967168  ;;  %v38_v0 = vlaneseq  ;;  %v36_v2 = vld [vmem:[#allocation5] sm:$0xff]  ;;  %s163_s4 = smov 2   ;;  %s164_s5 = smov 127   ;;  %v37_v12 = vld [vmem:[#allocation2] sm:$0xff] }
  0x26   :  { %s165_s6 = smov 1   ;;  %s166_s7 = smov 126  }
  0x27   :  { %v39_v1 = vand.u32 127, %v38_v0  ;;  %s167_s1 = smov [#allocation7]  }
  0x28   :  { %s72_s8 = sshll.u32 %s167_s1, 4  ;;  %s73_s8 = int_to_ptr.vmem [resolvable:$true] %s72_s8 }
  0x29   :  { %vm40_vm0 = vcmp.lt.s32.totalorder %v39_v1, 16  ;;  %s133_s9 = scalar_lea.vmem %s73_s8, 16  ;;  %s137_s10 = scalar_lea.vmem %s73_s8, 32 }
  0x2a   :  { %v41_v3 = vsel %vm40_vm0, %v36_v2, 0.0  ;;  %p134_p2 = scmp.ne.s32.totalorder %s73_s8, %s133_s9  ;;  %p138_p3 = scmp.lt.s32.totalorder %s73_s8, %s73_s8 }
  0x2b   :  { %42 = vrot.lane.b32.xlu0 %v41_v3, %s163_s4  ;;  %49 = vrot.lane.b32.xlu1 %v41_v3, %s164_s5  ;;  %p139_p4 = scmp.lt.s32.totalorder %s137_s10, %s133_s9 }
  0x2d   :  { %p140_p5 = por %p139_p4, %p138_p3 }
  0x2f   :  { %45 = vrot.lane.b32.xlu0 %v41_v3, %s165_s6  ;;  %52 = vrot.lane.b32.xlu1 %v41_v3, %s166_s7  ;;  %p141_p6 = pnand %p140_p5, %p134_p2 }
  0x9d   :  { %v43_v4 = vpop.permute.xlu0 %42  ;;  %v50_v5 = vpop.permute.xlu1 %49 }
  0xa1   :  { %v46_v6 = vpop.permute.xlu0 %45  ;;  %v53_v9 = vpop.permute.xlu1 %52 }
  0xa2   :  { %v47_v7 = vadd.f32 %v46_v6, %v43_v4 }
  0xa4   :  { %v48_v8 = vadd.f32 %v47_v7, %v41_v3 }
  0xa6   :  { %v51_v10 = vadd.f32 %v50_v5, %v48_v8 }
  0xa8   :  { %v54_v11 = vadd.f32 %v53_v9, %v51_v10 }
  0xaa   :  { %v55_v13 = vmul.f32 0.2, %v54_v11 }
  0xac   :  { %v56_v14 = vsub.f32 %v37_v12, %v55_v13 }
  0xae   :  { %v57_v15 = vmul.f32 %v56_v14, %v56_v14 }
  0xb0   :  { %v58_v16 = vsel %vm40_vm0, %v57_v15, 0.0 }
  0xb1   :  { %v59_v17 = vrot.slane %v58_v16, 4 }
  0xb3   :  { %v60_v18 = vadd.f32 %v59_v17, %v58_v16 }
  0xb5   :  { %v61_v19 = vrot.slane %v60_v18, 2 }
  0xb7   :  { %v62_v20 = vadd.f32 %v61_v19, %v60_v18 }
  0xb9   :  { %v63_v21 = vrot.slane %v62_v20, 1 }
  0xbb   :  { %v64_v22 = vadd.f32 %v63_v21, %v62_v20 }
  0xbd   :  { %65 = vst [vmem:[#allocation7] sm:$0x1] %v64_v22 }
  0xbe   :  { %144 = shalt.err (!%p141_p6)
}
  0xbf   :  { %s145_s13 = scalar_lea.hbm %s223_s2, 16 }
  0xc0   :  { %p146_p7 = scmp.ne.s32.totalorder %s223_s2, %s145_s13  ;;  %p149_p8 = scmp.lt.u32.totalorder %s145_s13, %s223_s2 }
  0xc2   :  { %p151_p9 = pnand %p149_p8, %p146_p7 }
  0xc4   :  { %154 = shalt.err (!%p151_p9)
}
  0xc5   :  { %75 = dma.vmem_to_hbm [thread:$0]  %s73_s8, 16, %s223_s2, [#allocation4]  }
  0xc6   :  { %159 = dma.done.wait [#allocation4], 16  }
  0xc7   :  { %160 = vsyncadd [#allocation4], 4294967280 }
  0xc8   :  { %79 = vsyncpa [#allocation3], 1 }
  0xc9   :  { %80 = vsyncpa [#allocation6], 1 }
  0xca   :  { %81 = vsyncpa [#allocation4], 1 }

</bundles_post_ra>
